<compile_context>
chip_gen: v6e
topology: v6e:2x2x1
jax: 0.10.0
libtpu: 0.0.40
codegen_flags: <defaults>
</compile_context>

<pallas_src>
import functools

import jax
import jax.numpy as jnp
from jax.experimental import pallas as pl
from jax.experimental.pallas import tpu as pltpu


def dwconv_kernel(w_ref, b_ref, x_ref, o_ref, *, width):
    # w_ref: VMEM (TC, 3)    per-channel taps [w_{-1}, w_0, w_{+1}]
    # b_ref: VMEM (TC, 1)    per-channel bias
    # x_ref/o_ref: VMEM (1, TC, L) with L = H*W (lane-dense, un-tiled)
    x = x_ref[0]                              # (TC, L)
    L = x.shape[-1]

    # Boundary masks along the flattened lane axis: positions that correspond
    # to the first / last column of each H-row (and the global wrap) get zero
    # neighbors, matching PyTorch's zero padding (0, 1).
    col = jax.lax.broadcasted_iota(jnp.int32, (1, L), 1) % width
    left_edge = col == 0
    right_edge = col == width - 1

    # x[w-1]: circular shift right by 1, then zero the masked positions.
    x_left = jnp.where(left_edge, 0.0, pltpu.roll(x, shift=1, axis=1))
    # x[w+1]: circular shift left by 1 == roll by (L-1) (shift must be >= 0).
    x_right = jnp.where(right_edge, 0.0, pltpu.roll(x, shift=L - 1, axis=1))

    w = w_ref[...]                            # (TC, 3)
    b = b_ref[...]                            # (TC, 1)

    o_ref[0] = (x_left * w[:, 0:1]
                + x * w[:, 1:2]
                + x_right * w[:, 2:3]
                + b)


def _pick_channel_tile(C, L, dtype_bytes, target_bytes):
    """Largest channel tile TC that is a multiple of 8, divides C, and keeps
    the (TC, L) block under target_bytes. Falls back to full C if C % 8 != 0."""
    if C % 8 != 0:
        return C                               # full extent (allowed by layout rule)
    best = 8
    tc = 8
    while tc <= C:
        if C % tc == 0 and tc * L * dtype_bytes <= target_bytes:
            best = tc
        tc += 8
    return best


def dwconv(x, weight, bias, *, target_block_bytes=2 << 20):
    """x: (B, C, H, W); weight: (C, 1, 1, 3); bias: (C,). Returns (B, C, H, W)."""
    B, C, H, W = x.shape
    L = H * W
    dtype_bytes = jnp.dtype(x.dtype).itemsize

    # Lane-dense layout: fold H into the lane axis. The lane axis is kept as a
    # single un-tiled block so the +/-1 shifts never cross a tile boundary.
    x3 = x.reshape(B, C, L)
    w2d = weight.reshape(C, 3).astype(x.dtype)
    b2d = bias.reshape(C, 1).astype(x.dtype)

    tc = _pick_channel_tile(C, L, dtype_bytes, target_block_bytes)
    grid = (B, C // tc)

    # Memory-bound op: ~5 flops per element, 2x data movement (read + write).
    cost = pl.CostEstimate(
        flops=5 * B * C * L,
        transcendentals=0,
        bytes_accessed=2 * B * C * L * dtype_bytes + C * 4 * dtype_bytes,
    )

    out = pl.pallas_call(
        functools.partial(dwconv_kernel, width=W),
        out_shape=jax.ShapeDtypeStruct((B, C, L), x.dtype),
        grid=grid,
        in_specs=[
            pl.BlockSpec((tc, 3), lambda b, c: (c, 0)),
            pl.BlockSpec((tc, 1), lambda b, c: (c, 0)),
            pl.BlockSpec((1, tc, L), lambda b, c: (b, c, 0)),
        ],
        out_specs=pl.BlockSpec((1, tc, L), lambda b, c: (b, c, 0)),
        compiler_params=pltpu.CompilerParams(
            dimension_semantics=("parallel", "parallel"),
            vmem_limit_bytes=64 << 20,
        ),
        cost_estimate=cost,
    )(w2d, b2d, x3)

    return out.reshape(B, C, H, W)


def dwconv_ref(x, weight, bias):
    """Pure-JAX reference of the PyTorch depthwise Conv2d (cross-correlation)."""
    C = x.shape[1]
    w = weight.reshape(C, 3)
    xp = jnp.pad(x, ((0, 0), (0, 0), (0, 0), (1, 1)))
    out = (w[:, 0][None, :, None, None] * xp[..., :-2]
           + w[:, 1][None, :, None, None] * xp[..., 1:-1]
           + w[:, 2][None, :, None, None] * xp[..., 2:])
    return out + bias[None, :, None, None]


if __name__ == "__main__":
    key = jax.random.PRNGKey(0)
    kx, kw, kb = jax.random.split(key, 3)

    B, C, H, W = 2, 8, 12, 16   # small shapes; PyTorch default dim=768 is synthetic here
    x = jax.random.normal(kx, (B, C, H, W), dtype=jnp.float32)
    # nn.Conv2d(dim, dim, (1,3), groups=dim): weight (dim, 1, 1, 3), bias (dim,)
    weight = jax.random.normal(kw, (C, 1, 1, 3), dtype=jnp.float32) * 0.1
    bias = jax.random.normal(kb, (C,), dtype=jnp.float32) * 0.1

    out = dwconv(x, weight, bias)
    out = jax.block_until_ready(out)

    ref = dwconv_ref(x, weight, bias)
    assert out.shape == (B, C, H, W)
    assert jnp.allclose(out, ref, atol=1e-5, rtol=1e-5), "mismatch vs reference"

    print("KERNEL_OK")
</pallas_src>

<mosaic_0001>
module attributes {stable_mosaic.version = 11 : i64} {
  func.func @dwconv_kernel(%arg0: i32, %arg1: i32, %arg2: memref<8x3xf32, #tpu.memory_space<vmem>>, %arg3: memref<8x1xf32, #tpu.memory_space<vmem>>, %arg4: memref<1x8x192xf32, #tpu.memory_space<vmem>>, %arg5: memref<1x8x192xf32, #tpu.memory_space<vmem>>) attributes {dimension_semantics = [#tpu.dimension_semantics<parallel>, #tpu.dimension_semantics<parallel>], iteration_bounds = array<i64: 2, 1>, scalar_prefetch = 0 : i64, scratch_operands = 0 : i64, tpu.core_type = #tpu.core_type<tc>, window_params = [{transform_indices = @transform_0, window_bounds = array<i64: 8, 3>}, {transform_indices = @transform_1, window_bounds = array<i64: 8, 1>}, {transform_indices = @transform_2, window_bounds = array<i64: 1, 8, 192>}, {transform_indices = @transform_3, window_bounds = array<i64: 1, 8, 192>}]} {
    %c0 = arith.constant 0 : index
    %c0_0 = arith.constant 0 : index
    %c0_1 = arith.constant 0 : index
    %0 = vector.load %arg4[%c0, %c0_0, %c0_1] : memref<1x8x192xf32, #tpu.memory_space<vmem>>, vector<1x8x192xf32>
    %1 = vector.shape_cast %0 : vector<1x8x192xf32> to vector<8x192xf32>
    %2 = tpu.iota {dimensions = array<i32: 1>} : vector<1x192xi32>
    %c16_i32 = arith.constant 16 : i32
    %c0_i32 = arith.constant 0 : i32
    %3 = arith.cmpi eq, %c16_i32, %c0_i32 : i32
    %c1_i32 = arith.constant 1 : i32
    %4 = arith.select %3, %c1_i32, %c16_i32 : i32
    %5 = vector.broadcast %4 : i32 to vector<1x192xi32>
    %6 = arith.remsi %2, %5 : vector<1x192xi32>
    %c0_i32_2 = arith.constant 0 : i32
    %7 = vector.broadcast %c0_i32_2 : i32 to vector<1x192xi32>
    %8 = arith.cmpi ne, %6, %7 : vector<1x192xi32>
    %c0_i32_3 = arith.constant 0 : i32
    %9 = vector.broadcast %c0_i32_3 : i32 to vector<1x192xi32>
    %10 = arith.cmpi slt, %6, %9 : vector<1x192xi32>
    %c0_i32_4 = arith.constant 0 : i32
    %11 = arith.cmpi slt, %4, %c0_i32_4 : i32
    %12 = vector.broadcast %11 : i1 to vector<1x192xi1>
    %13 = vector.broadcast %12 : vector<1x192xi1> to vector<1x192xi1>
    %14 = arith.xori %10, %13 : vector<1x192xi1>
    %15 = arith.andi %14, %8 : vector<1x192xi1>
    %16 = vector.broadcast %4 : i32 to vector<1x192xi32>
    %17 = arith.addi %6, %16 : vector<1x192xi32>
    %18 = arith.select %15, %17, %6 : vector<1x192xi1>, vector<1x192xi32>
    %c0_i32_5 = arith.constant 0 : i32
    %19 = vector.broadcast %c0_i32_5 : i32 to vector<1x192xi32>
    %20 = arith.cmpi eq, %18, %19 : vector<1x192xi32>
    %c15_i32 = arith.constant 15 : i32
    %21 = vector.broadcast %c15_i32 : i32 to vector<1x192xi32>
    %22 = arith.cmpi eq, %18, %21 : vector<1x192xi32>
    %c1_i32_6 = arith.constant 1 : i32
    %23 = tpu.dynamic_rotate %1 by %c1_i32_6 dim 1 : vector<8x192xf32>, i32 -> vector<8x192xf32>
    %cst = arith.constant 0.000000e+00 : f32
    %24 = vector.shape_cast %20 : vector<1x192xi1> to vector<1x192xi1>
    %25 = vector.broadcast %24 : vector<1x192xi1> to vector<8x192xi1>
    %26 = vector.broadcast %cst : f32 to vector<8x192xf32>
    %27 = arith.select %25, %26, %23 : vector<8x192xi1>, vector<8x192xf32>
    %c191_i32 = arith.constant 191 : i32
    %28 = tpu.dynamic_rotate %1 by %c191_i32 dim 1 : vector<8x192xf32>, i32 -> vector<8x192xf32>
    %cst_7 = arith.constant 0.000000e+00 : f32
    %29 = vector.shape_cast %22 : vector<1x192xi1> to vector<1x192xi1>
    %30 = vector.broadcast %29 : vector<1x192xi1> to vector<8x192xi1>
    %31 = vector.broadcast %cst_7 : f32 to vector<8x192xf32>
    %32 = arith.select %30, %31, %28 : vector<8x192xi1>, vector<8x192xf32>
    %c0_8 = arith.constant 0 : index
    %c0_9 = arith.constant 0 : index
    %33 = vector.load %arg2[%c0_8, %c0_9] : memref<8x3xf32, #tpu.memory_space<vmem>>, vector<8x3xf32>
    %c0_10 = arith.constant 0 : index
    %c0_11 = arith.constant 0 : index
    %34 = vector.load %arg3[%c0_10, %c0_11] : memref<8x1xf32, #tpu.memory_space<vmem>>, vector<8x1xf32>
    %35 = vector.extract_strided_slice %33 {offsets = [0, 0], sizes = [8, 1], strides = [1, 1]} : vector<8x3xf32> to vector<8x1xf32>
    %36 = vector.broadcast %35 : vector<8x1xf32> to vector<8x192xf32>
    %37 = arith.mulf %27, %36 : vector<8x192xf32>
    %38 = vector.extract_strided_slice %33 {offsets = [0, 1], sizes = [8, 1], strides = [1, 1]} : vector<8x3xf32> to vector<8x1xf32>
    %39 = vector.broadcast %38 : vector<8x1xf32> to vector<8x192xf32>
    %40 = arith.mulf %1, %39 : vector<8x192xf32>
    %41 = arith.addf %37, %40 : vector<8x192xf32>
    %42 = vector.extract_strided_slice %33 {offsets = [0, 2], sizes = [8, 1], strides = [1, 1]} : vector<8x3xf32> to vector<8x1xf32>
    %43 = vector.broadcast %42 : vector<8x1xf32> to vector<8x192xf32>
    %44 = arith.mulf %32, %43 : vector<8x192xf32>
    %45 = arith.addf %41, %44 : vector<8x192xf32>
    %46 = vector.broadcast %34 : vector<8x1xf32> to vector<8x192xf32>
    %47 = arith.addf %45, %46 : vector<8x192xf32>
    %c0_12 = arith.constant 0 : index
    %c0_13 = arith.constant 0 : index
    %c0_14 = arith.constant 0 : index
    %48 = vector.load %arg5[%c0_12, %c0_13, %c0_14] : memref<1x8x192xf32, #tpu.memory_space<vmem>>, vector<1x8x192xf32>
    %49 = vector.shape_cast %48 : vector<1x8x192xf32> to vector<8x192xf32>
    %50 = vector.shape_cast %47 : vector<8x192xf32> to vector<1x8x192xf32>
    tpu.vector_store %arg5[%c0_12, %c0_13, %c0_14], %50 {strides = array<i32>} : memref<1x8x192xf32, #tpu.memory_space<vmem>>, vector<1x8x192xf32>,
    return
  }
  func.func @transform_0(%arg0: i32, %arg1: i32) -> (i32, i32) {
    %c0_i32 = arith.constant 0 : i32
    %c0_i32_0 = arith.constant 0 : i32
    return %arg1, %c0_i32 : i32, i32
  }
  func.func @transform_1(%arg0: i32, %arg1: i32) -> (i32, i32) {
    %c0_i32 = arith.constant 0 : i32
    %c0_i32_0 = arith.constant 0 : i32
    return %arg1, %c0_i32 : i32, i32
  }
  func.func @transform_2(%arg0: i32, %arg1: i32) -> (i32, i32, i32) {
    %c0_i32 = arith.constant 0 : i32
    %c0_i32_0 = arith.constant 0 : i32
    return %arg0, %arg1, %c0_i32 : i32, i32, i32
  }
  func.func @transform_3(%arg0: i32, %arg1: i32) -> (i32, i32, i32) {
    %c0_i32 = arith.constant 0 : i32
    %c0_i32_0 = arith.constant 0 : i32
    return %arg0, %arg1, %c0_i32 : i32, i32, i32
  }
}

</mosaic_0001>

<bundles_post_ra>
// kernel: tpu_custom_call.1
= control target key start
LH: loop header
LB: loop body
LE: loop exit
PB: predicated region body
PF: predicated region fallthrough
CT: control target
= control target key end

     0   :  { %8 = vsyncpa [#allocation3], 0  ;;  %s855_s0 = inlined_call_operand.vmem [shape: f32[8,3], index: 0, kind: input, shape index: {}]   ;;  %s856_s1 = inlined_call_operand.vmem [shape: f32[8,1], index: 1, kind: input, shape index: {}]   ;;  %s857_s2 = inlined_call_operand.hbm [shape: f32[2,8,192], index: 2, kind: input, shape index: {}]   ;;  %s858_s3 = inlined_call_operand.hbm [shape: f32[2,8,192], index: 3, kind: output, shape index: {}]  }
   0x1   :  { %10 = vsyncpa [#allocation3 + $0x1], 0 }
   0x2   :  { %11 = vsyncpa [#allocation4], 0 }
   0x3   :  { %13 = vsyncpa [#allocation4 + $0x1], 0  ;;  %s705_s12 = smov 0   ;;  %s707_s13 = smov 0  }
   0x4   :  { %s709_s14 = smov 0   ;;  %s711_s15 = smov 0  }
   0x5   :  { %s713_s16 = smov 0   ;;  %s715_s17 = smov 0  }
   0x6 LB: > { %s476_s18 = sadd.s32 4294967295, %s675_s17   ;;  %s477_s19 = sadd.s32 4294967294, %s675_s17   ;;  %s675_s17 = sphi %s715_s17, %s19_s17   ;;  %s671_s16 = sphi %s713_s16, %s870_s16   ;;  %s667_s15 = sphi %s711_s15, %s869_s15   ;;  %s663_s14 = sphi %s709_s14, %s868_s14   ;;  %s659_s13 = sphi %s707_s13, %s867_s13   ;;  %s655_s12 = sphi %s705_s12, %s866_s12  }
   0x7   : > { %s31_s20 = sadd.s32 1, %s671_s16  ;;  %s92_s21 = sadd.s32 1, %s663_s14 }
   0x8   : > { %p33_p0 = scmp.ge.s32.totalorder %s31_s20, 2  ;;  %p99_p1 = scmp.ne.s32.totalorder %s663_s14, %s659_s13 }
   0x9   : > { %p100_p2 = scmp.eq.s32.totalorder %s675_s17, 0  ;;  %p105_p3 = scmp.ne.s32.totalorder %s659_s13, %s655_s12 }
   0xa   : > { %s872_s20 = smov (%p33_p0, %s31_s20), 0  ;;  %p106_p5 = scmp.eq.s32.totalorder %s476_s18, 0 }
   0xb   : > { %p746_p4 = por %p100_p2, %p99_p1  ;;  %s87_s23 = ssub.s32 %s671_s16, %s872_s20 }
   0xc   : > { %p131_p6 = scmp.eq.s32.totalorder %s476_s18, 1  ;;  %p90_p7 = scmp.eq.s32.totalorder %s87_s23, 0 }
   0xd   : > { %p752_p8 = por %p106_p5, %p105_p3  ;;  %p137_p10 = scmp.eq.s32.totalorder %s477_s19, 1 }
   0xe   : > { %p756_p9 = por %p131_p6, %p99_p1  ;;  %p507_p13 = scmp.lt.s32.totalorder %s675_s17, 2 }
   0xf   : > { %s761_s26 = scalar_select %p90_p7, %s663_s14, %s92_s21  }
  0x10   : > { %p763_p11 = por %p137_p10, %p105_p3  ;;  %s171_s28 = sand.u32 1, %s663_s14  }
  0x11   : > { %s482_s29 = sshll.u32 %s171_s28, 4  ;;  %s493_s30 = sshll.u32 %s671_s16, 8 }
  0x12   : > { %s862_s27 = scalar_select %p763_p11, 1, 0 }
  0x13   : > { %s183_s6 = scalar_lea.hbm %s857_s2, %s493_s30  ;;  %s175_s7 = scalar_lea.vmem [#allocation2], %s482_s29 }
  0x14   : > { %s185_s8 = sshll.u32 %s175_s7, 4  ;;  %p776_p0 = pnand %p507_p13, %p746_p4  ;;  %s186_s8 = int_to_ptr.vmem [resolvable:$true] %s185_s8 }
  0x15   : > { %p485_p1 = scmp.ge.s32.totalorder %s675_s17, 1  ;;  %p190_p2 = scmp.lt.s32.totalorder %s675_s17, 3 }
  0x16   : > { %s172_s10 = scalar_lea.sflag [#allocation3], %s171_s28  ;;  %p569_p3 = pneg %p776_p0 }
  0x17   : > { %s580_s11 = scalar_lea.vmem %s186_s8, 256  ;;  %s677_s18 = smov [#allocation2]  }
  0x18   : > { %p581_p5 = scmp.ne.s32.totalorder %s186_s8, %s580_s11  ;;  %s585_s19 = sshll.u32 %s677_s18, 4  ;;  %s586_s19 = int_to_ptr.vmem [resolvable:$false] %s585_s19 }
  0x19   : > { %s587_s21 = scalar_lea.vmem %s586_s19, 512  ;;  %p588_p10 = scmp.lt.s32.totalorder %s186_s8, %s586_s19 }
  0x1a   : > { %p583_p6 = pnand %p581_p5, %p569_p3  ;;  %p589_p12 = scmp.lt.s32.totalorder %s587_s21, %s580_s11 }
  0x1c   : > { %p584_p7 = pneg %p583_p6  ;;  %p590_p4 = por %p589_p12, %p588_p10 }
  0x1e   : > { %p591_p13 = pnand %p590_p4, %p584_p7 }
  0x20   : > { %594 = shalt.err (!%p591_p13)
}
  0x21   : > { %502 = dma.hbm_to_vmem [thread:$0]  (!%p776_p0), %s183_s6, 256, %s186_s8, %s172_s10  }
  0x22   : > { %p191_p11 = pnand %p485_p1, %p190_p2 }
  0x23   : > { %s791_s22 = sand.u32 (!%p191_p11), 1, %s659_s13  }
  0x24   : > { %194 = sbr.rel (%p191_p11) target bundleno = 416 (0x1a0), region = 32  ;;  %s486_s23 = sshll.u32 (!%p191_p11), %s791_s22, 4 }
  0x25   : > { %s197_s28 = scalar_lea.sflag (!%p191_p11), [#allocation3], %s791_s22  ;;  %s200_s29 = scalar_lea.vmem (!%p191_p11), [#allocation2], %s486_s23 }
  0x29   : > { %646 = dma.done.wait (%p752_p8), %s197_s28, 256  }
  0x2a   : > { %648 = vsyncadd (%p752_p8), %s197_s28, 4294967040  ;;  %v678_v0 = vmov 0   ;;  %v679_v1 = vmov 2   ;;  %v239_v2 = vld [vmem:[%s200_s29] sm:$0xff]  ;;  %s680_s5 = smov 64   ;;  %v681_v4 = vmov 1   ;;  %v241_v11 = vlaneseq }
  0x2b   : > { %563 = vset.pattern.permute.xlu1 %v678_v0  ;;  %565 = vset.pattern.permute.xlu0 %v679_v1  ;;  %v310_v3 = vld [vmem:[%s855_s0] sm:$0xff]  ;;  %v240_v5 = vld [vmem:[%s200_s29 + $0x8] sm:$0xff]  ;;  %vm272_vm0 = vcmask 1048064   ;;  %s682_s24 = smov 65   ;;  %s683_s6 = smov 127   ;;  %vm289_vm2 = vcmask 531456  }
  0x2c   : > { %273 = vrot.lane.b32.xlu0 %v239_v2, %s680_s5  ;;  %314 = vperm.xlu1 %563, %v310_v3   ;;  %v311_v8 = vld [vmem:[%s856_s1] sm:$0xff]  ;;  %v242_v13 = vand.u32 127, %v241_v11  ;;  %vm304_vm5 = vcmask 1039360   ;;  %s494_s9 = sshll.u32 %s667_s15, 8  ;;  %s230_s10 = scalar_lea.vmem [#allocation5], %s486_s23  ;;  %vm343_vm7 = vcmask 523264  }
  0x2d   : > { %s362_s11 = sshll.u32 %s230_s10, 4  ;;  %s813_s21 = scalar_lea.hbm %s858_s3, %s494_s9  ;;  %s363_s11 = int_to_ptr.vmem [resolvable:$true] %s362_s11 }
  0x2e   : > { %v243_v15 = vadd.s32 128, %v242_v13  ;;  %v248_v17 = vand.u32 15, %v242_v13  ;;  %s346_s28 = scalar_lea.sflag [#allocation4], %s791_s22  ;;  %s595_s29 = scalar_lea.vmem %s363_s11, 256 }
  0x2f   : > { %p596_p8 = scmp.ne.s32.totalorder %s363_s11, %s595_s29  ;;  %s684_s15 = smov [#allocation5]  }
  0x30   : > { %564 = vset.pattern.permute.xlu1 %v681_v4  ;;  %v255_v16 = vand.u32 15, %v243_v15  ;;  %vm268_vm3 = vcmp.eq.s32.totalorder %v248_v17, 0  ;;  %vm270_vm6 = vcmp.eq.s32.totalorder %v248_v17, 15  ;;  %s599_s23 = sshll.u32 %s684_s15, 4  ;;  %s600_s23 = int_to_ptr.vmem [resolvable:$false] %s599_s23 }
  0x31   : > { %320 = vperm.xlu1 %564, %v310_v3   ;;  %p597_p11 = pnand %p596_p8, %p756_p9  ;;  %s601_s30 = scalar_lea.vmem %s600_s23, 512 }
  0x32   : > { %vm269_vm1 = vcmp.eq.s32.totalorder %v255_v16, 0  ;;  %vm271_vm4 = vcmp.eq.s32.totalorder %v255_v16, 15  ;;  %p602_p0 = scmp.lt.s32.totalorder %s363_s11, %s600_s23  ;;  %p603_p1 = scmp.lt.s32.totalorder %s601_s30, %s595_s29 }
  0x33   : > { %p598_p12 = pneg %p597_p11 }
  0x34   : > { %p604_p2 = por %p603_p1, %p602_p0 }
  0x36   : > { %p605_p3 = pnand %p604_p2, %p598_p12 }
  0x9e   : > { %v274_v6 = vpop.permute.xlu0 %273 }
  0x9f   : > { %v275_v7 = vsel %vm272_vm0, %v274_v6, %v240_v5 }
  0xa0   : > { %285 = vrot.lane.b32.xlu1 %v275_v7, %s682_s24  ;;  %276 = vrot.lane.b32.xlu0 %v275_v7, %s680_s5 }
  0xa4   : > { %328 = vperm.xlu0 %565, %v310_v3  }
  0xa7   : > { %v315_v12 = vpop.permute.xlu1 %314 }
  0xa8   : > { %300 = vrot.lane.b32.xlu0 %v239_v2, %s683_s6 }
  0xa9   : > { %566 = vset.pattern.permute.xlu0 %v678_v0 }
  0xac   : > { %337 = vperm.xlu0 %566, %v311_v8   ;;  %v321_v14 = vpop.permute.xlu1 %320 }
  0xad   : > { %v324_v27 = vmul.f32 %v321_v14, %v240_v5  ;;  %v323_v29 = vmul.f32 %v321_v14, %v239_v2 }
 0x112   : > { %v277_v9 = vpop.permute.xlu0 %276  ;;  %v286_v18 = vpop.permute.xlu1 %285 }
 0x113   : > { %v278_v10 = vsel %vm272_vm0, %v277_v9, %v274_v6 }
 0x114   : > { %287 = vrot.lane.b32.xlu1 %v278_v10, %s682_s24 }
 0x118   : > { %302 = vrot.lane.b32.xlu1 %v275_v7, %s683_s6 }
 0x11f   : > { %v329_v19 = vpop.permute.xlu0 %328 }
 0x123   : > { %v301_v25 = vpop.permute.xlu0 %300 }
 0x127   : > { %v338_v36 = vpop.permute.xlu0 %337 }
 0x186   : > { %v288_v20 = vpop.permute.xlu1 %287 }
 0x187   : > { %v290_v21 = vsel %vm289_vm2, %v286_v18, %v288_v20  ;;  %v294_v22 = vsel %vm269_vm1, 0.0, %v288_v20 }
 0x188   : > { %v293_v23 = vsel %vm268_vm3, 0.0, %v290_v21  ;;  %v318_v24 = vmul.f32 %v315_v12, %v294_v22 }
 0x189   : > { %v317_v26 = vmul.f32 %v315_v12, %v293_v23 }
 0x18a   : > { %v303_v28 = vpop.permute.xlu1 %302  ;;  %v326_v34 = vadd.f32 %v324_v27, %v318_v24 }
 0x18b   : > { %v305_v30 = vsel %vm304_vm5, %v301_v25, %v303_v28  ;;  %v309_v31 = vsel %vm271_vm4, 0.0, %v303_v28  ;;  %v325_v37 = vadd.f32 %v323_v29, %v317_v26 }
 0x18c   : > { %v308_v32 = vsel %vm270_vm6, 0.0, %v305_v30  ;;  %v332_v33 = vmul.f32 %v329_v19, %v309_v31 }
 0x18d   : > { %v331_v35 = vmul.f32 %v329_v19, %v308_v32 }
 0x18e   : > { %v334_v38 = vadd.f32 %v332_v33, %v326_v34 }
 0x18f   : > { %v333_v39 = vadd.f32 %v331_v35, %v325_v37 }
 0x190   : > { %v341_v40 = vadd.f32 %v338_v36, %v334_v38 }
 0x191   : > { %v340_v41 = vadd.f32 %v338_v36, %v333_v39 }
 0x192   : > { %344 = vst.msk [vmem:[%s230_s10 + $0x8] sm:$0xff] %vm343_vm7, %v341_v40 }
 0x193   : > { %342 = vst [vmem:[%s230_s10] sm:$0xff] %v340_v41 }
 0x194   : > { %608 = shalt.err (!%p605_p3)
}
 0x195   : > { %s609_s4 = scalar_lea.hbm %s813_s21, 256  ;;  %s613_s24 = scalar_lea.hbm %s858_s3, 512 }
 0x196   : > { %p610_p5 = scmp.ne.s32.totalorder %s813_s21, %s609_s4  ;;  %p614_p10 = scmp.lt.s32.totalorder %s813_s21, %s858_s3 }
 0x197   : > { %p615_p4 = scmp.lt.s32.totalorder %s613_s24, %s609_s4 }
 0x198   : > { %p611_p6 = pnand %p610_p5, %p756_p9 }
 0x199   : > { %p616_p13 = por %p615_p4, %p614_p10 }
 0x19a   : > { %p612_p7 = pneg %p611_p6 }
 0x19c   : > { %p617_p8 = pnand %p616_p13, %p612_p7 }
 0x19e   : > { %620 = shalt.err (!%p617_p8)
}
 0x19f   : > { %497 = dma.vmem_to_hbm [thread:$0]  (%p756_p9), %s363_s11, 256, %s813_s21, %s346_s28  }
 0x1a0 PF: > { %s374_s8 = sand.u32 1, %s655_s12   ;;  %p864_p11 = scmp.ne.s32.totalorder %s862_s27, 0 }
 0x1a1   : > { %p865_p12 = scmp.ge.s32.totalorder %s675_s17, 2  ;;  %s375_s9 = scalar_lea.sflag [#allocation4], %s374_s8 }
 0x1a3   : > { %p504_p0 = pnand %p865_p12, %p864_p11 }
 0x1a5   : > { %p505_p1 = pneg %p504_p0 }
 0x1a7   : > { %650 = dma.done.wait (%p505_p1), %s375_s9, 256  }
 0x1a8   : > { %652 = vsyncadd (%p505_p1), %s375_s9, 4294967040  ;;  %s19_s17 = sadd.s32 1, %s675_s17   ;;  %s866_s12 = smov %s659_s13 }
 0x1a9   : > { %p16_p2 = scmp.ge.s32.totalorder %s19_s17, 4   ;;  %s867_s13 = smov %s663_s14 }
 0x1aa   : > { %s868_s14 = smov %s761_s26  ;;  %s869_s15 = smov %s671_s16 }
 0x1ab   : > { %s870_s16 = smov %s872_s20  ;;  %18 = sbr.rel (!%p16_p2) target bundleno = 6 (0x6), region = 83 }
 0x1b0   :  { %380 = vsyncpa [#allocation3], 1 }
 0x1b1   :  { %382 = vsyncpa [#allocation3 + $0x1], 1 }
 0x1b2   :  { %383 = vsyncpa [#allocation4], 1 }
 0x1b3   :  { %385 = vsyncpa [#allocation4 + $0x1], 1 }

</bundles_post_ra>
